<compile_context>
chip_gen: v7x
topology: tpu7x:2x2x1
jax: 0.10.0
libtpu: 0.0.40
codegen_flags: <defaults>
</compile_context>

<pallas_src>
import functools

import jax
import jax.numpy as jnp
from jax.experimental import pallas as pl
from jax.experimental.pallas import tpu as pltpu


# --------------------------------------------------------------------------
# Kernels
# --------------------------------------------------------------------------

def _fc(v, w1t_ref, b1_ref, w2t_ref, b2_ref):
    """Shared 1x1-conv MLP: (N, C) -> (N, C), f32."""
    h = jnp.dot(v, w1t_ref[...], preferred_element_type=jnp.float32) + b1_ref[...]
    h = jnp.maximum(h, 0.0)
    return jnp.dot(h, w2t_ref[...], preferred_element_type=jnp.float32) + b2_ref[...]


def _channel_attention_kernel(x_ref, w1t_ref, b1_ref, w2t_ref, b2_ref, o_ref,
                              *, hw_true):
    """Single-pass path: block = (Bt, C, HW) with HW equal to the full array dim."""
    x = x_ref[...].astype(jnp.float32)                 # (Bt, C, HW) f32 math
    inv_hw = 1.0 / float(hw_true)

    avg = jnp.sum(x, axis=2) * inv_hw                  # (Bt, C)
    mx = jnp.max(x, axis=2)                            # (Bt, C)

    # Two separate tiny matmul chains (no sublane concat / relayout).
    gate = jax.nn.sigmoid(_fc(avg, w1t_ref, b1_ref, w2t_ref, b2_ref)
                          + _fc(mx, w1t_ref, b1_ref, w2t_ref, b2_ref))   # (Bt, C)

    o_ref[...] = (x * gate[:, :, None]).astype(o_ref.dtype)


def _pool_gate_kernel(x_ref, w1t_ref, b1_ref, w2t_ref, b2_ref, gate_ref,
                      sum_sc, max_sc, *, hw_true, thw):
    """Two-pass path, pass 1: accumulate sum/max over spatial tiles, emit gate."""
    h = pl.program_id(1)
    n_h = pl.num_programs(1)

    @pl.when(h == 0)
    def _():
        sum_sc[...] = jnp.zeros_like(sum_sc)
        max_sc[...] = jnp.full_like(max_sc, -jnp.inf)

    x = x_ref[...].astype(jnp.float32)                 # (1, C, thw)

    def accumulate(xs, xm):
        sum_sc[...] = sum_sc[...] + jnp.sum(xs, axis=2)
        max_sc[...] = jnp.maximum(max_sc[...], jnp.max(xm, axis=2))

    if hw_true % thw == 0:
        accumulate(x, x)
    else:
        # Mask only the tail tile (avoids full-block where-temps on every step).
        @pl.when(h < n_h - 1)
        def _():
            accumulate(x, x)

        @pl.when(h == n_h - 1)
        def _():
            lane = jax.lax.broadcasted_iota(jnp.int32, x.shape, 2)
            valid = (h * thw + lane) < hw_true
            accumulate(jnp.where(valid, x, 0.0), jnp.where(valid, x, -jnp.inf))

    @pl.when(h == n_h - 1)
    def _():
        avg = sum_sc[...] * (1.0 / float(hw_true))      # (1, C)
        gate = jax.nn.sigmoid(_fc(avg, w1t_ref, b1_ref, w2t_ref, b2_ref)
                              + _fc(max_sc[...], w1t_ref, b1_ref, w2t_ref, b2_ref))
        gate_ref[...] = gate[:, :, None]                # (1, C, 1)


def _apply_gate_kernel(x_ref, gate_ref, o_ref):
    """Two-pass path, pass 2: stream x and scale by the per-(b, c) gate."""
    x = x_ref[...].astype(jnp.float32)                  # (1, C, thw)
    g = gate_ref[...]                                   # (1, C, 1) f32
    o_ref[...] = (x * g).astype(o_ref.dtype)


# --------------------------------------------------------------------------
# Block / VMEM sizing
# --------------------------------------------------------------------------

def _vmem_budget_bytes():
    """Per-generation scoped-VMEM budget with headroom for Mosaic scratch."""
    cap = None
    try:
        cap = getattr(pltpu.get_tpu_info(), "vmem_capacity_bytes", None)
    except Exception:
        cap = None
    if not cap:
        cap = 64 << 20                      # conservative: assume v7x-sized VMEM
    if cap >= (128 << 20):
        return 96 << 20                     # v5e / v6e: well above 16/32 MiB defaults
    return max(32 << 20, cap - (12 << 20))  # v7x: ~52 MiB, never the full 64 MiB


def _choose_bt(B, C, HW, itemsize, budget):
    """Fused-batch count for the single-pass path; None => spatial-tiling path."""
    per_batch_io = C * HW * itemsize
    # 2x(in) + 2x(out) pipeline buffers in the I/O dtype + ~2 block-sized f32 temps.
    per_batch_vmem = 4 * per_batch_io + 2 * C * HW * 4
    headroom = 8 << 20
    max_bt_vmem = (budget - headroom) // per_batch_vmem
    if max_bt_vmem < 1:
        return None                         # even a single-batch block won't fit
    # ~8-16 MiB I/O blocks are enough to amortize the ~0.35us per-step overhead.
    max_bt_amort = max(1, (12 << 20) // per_batch_io)
    cap = int(min(max_bt_vmem, max_bt_amort))
    divisors = [d for d in range(1, B + 1) if B % d == 0 and d <= cap]
    # Prefer an even grid of >= 4 steps (>= 2 per TensorCore on v7x), then >= 2.
    for pred in (lambda d: B // d >= 4 and (B // d) % 2 == 0,
                 lambda d: B // d >= 2,
                 lambda d: True):
        cands = [d for d in divisors if pred(d)]
        if cands:
            return max(cands)
    return 1


def _choose_thw(C, HW, itemsize, budget):
    """Spatial tile (lanes) for the two-pass path."""
    headroom = 8 << 20
    per_lane_vmem = C * (4 * itemsize + 2 * 4)
    max_lanes = max(128, (budget - headroom) // per_lane_vmem)
    amort_lanes = max(128, (12 << 20) // (C * itemsize))
    thw = min(HW, max_lanes, amort_lanes)
    if thw < HW:
        thw = max(128, (thw // 128) * 128)  # lane-aligned DMA tiles
    return int(min(thw, HW))


# --------------------------------------------------------------------------
# Wrapper
# --------------------------------------------------------------------------

def channel_attention(x_nchw, w1, b1, w2, b2, *,
                      force_spatial_tiling=False, spatial_tile=None):
    """ChannelAttention forward.

    x_nchw: (B, C, H, W), f32 or bf16 (output matches input dtype; math is f32).
    w1: (Ch, C), b1: (Ch,)  -- Conv2d(C, Ch, 1) weights (1x1 kernel squeezed).
    w2: (C, Ch), b2: (C,)   -- Conv2d(Ch, C, 1) weights.
    """
    B, C, H, W = x_nchw.shape
    Ch = w1.shape[0]
    HW = H * W
    io_dtype = x_nchw.dtype
    itemsize = jnp.dtype(io_dtype).itemsize

    x3 = x_nchw.reshape(B, C, HW)           # free reshape view; no pad, no copy

    w1t = w1.astype(jnp.float32).T          # (C, Ch)
    w2t = w2.astype(jnp.float32).T          # (Ch, C)
    b1r = b1.astype(jnp.float32).reshape(1, Ch)
    b2r = b2.astype(jnp.float32).reshape(1, C)

    budget = _vmem_budget_bytes()
    bt = None if force_spatial_tiling else _choose_bt(B, C, HW, itemsize, budget)

    if bt is not None:
        # ---------------- single-pass, fused-batch path ----------------
        kernel = functools.partial(_channel_attention_kernel, hw_true=HW)
        out = pl.pallas_call(
            kernel,
            out_shape=jax.ShapeDtypeStruct((B, C, HW), io_dtype),
            grid_spec=pltpu.PrefetchScalarGridSpec(
                num_scalar_prefetch=0,
                grid=(B // bt,),
                in_specs=[
                    pl.BlockSpec((bt, C, HW), lambda b: (b, 0, 0)),   # x
                    pl.BlockSpec((C, Ch), lambda b: (0, 0)),          # w1^T
                    pl.BlockSpec((1, Ch), lambda b: (0, 0)),          # b1
                    pl.BlockSpec((Ch, C), lambda b: (0, 0)),          # w2^T
                    pl.BlockSpec((1, C), lambda b: (0, 0)),           # b2
                ],
                out_specs=pl.BlockSpec((bt, C, HW), lambda b: (b, 0, 0)),
            ),
            compiler_params=pltpu.CompilerParams(
                dimension_semantics=("parallel",),
                vmem_limit_bytes=budget),
        )(x3, w1t, b1r, w2t, b2r)
        return out.reshape(B, C, H, W)

    # ---------------- two-pass spatial-tiling fallback ----------------
    thw = int(min(spatial_tile, HW)) if spatial_tile is not None else \
        _choose_thw(C, HW, itemsize, budget)
    n_hw = pl.cdiv(HW, thw)

    pool_kernel = functools.partial(_pool_gate_kernel, hw_true=HW, thw=thw)
    gate = pl.pallas_call(
        pool_kernel,
        out_shape=jax.ShapeDtypeStruct((B, C, 1), jnp.float32),
        grid_spec=pltpu.PrefetchScalarGridSpec(
            num_scalar_prefetch=0,
            grid=(B, n_hw),
            in_specs=[
                pl.BlockSpec((1, C, thw), lambda b, h: (b, 0, h)),
                pl.BlockSpec((C, Ch), lambda b, h: (0, 0)),
                pl.BlockSpec((1, Ch), lambda b, h: (0, 0)),
                pl.BlockSpec((Ch, C), lambda b, h: (0, 0)),
                pl.BlockSpec((1, C), lambda b, h: (0, 0)),
            ],
            out_specs=pl.BlockSpec((1, C, 1), lambda b, h: (b, 0, 0)),
            scratch_shapes=[pltpu.VMEM((1, C), jnp.float32),    # running sum
                            pltpu.VMEM((1, C), jnp.float32)],   # running max
        ),
        compiler_params=pltpu.CompilerParams(
            dimension_semantics=("parallel", "arbitrary"),
            vmem_limit_bytes=budget),
    )(x3, w1t, b1r, w2t, b2r)

    out = pl.pallas_call(
        _apply_gate_kernel,
        out_shape=jax.ShapeDtypeStruct((B, C, HW), io_dtype),
        grid_spec=pltpu.PrefetchScalarGridSpec(
            num_scalar_prefetch=0,
            grid=(B, n_hw),
            in_specs=[
                pl.BlockSpec((1, C, thw), lambda b, h: (b, 0, h)),
                pl.BlockSpec((1, C, 1), lambda b, h: (b, 0, 0)),
            ],
            out_specs=pl.BlockSpec((1, C, thw), lambda b, h: (b, 0, h)),
        ),
        compiler_params=pltpu.CompilerParams(
            dimension_semantics=("parallel", "parallel"),
            vmem_limit_bytes=budget),
    )(x3, gate)
    return out.reshape(B, C, H, W)


# --------------------------------------------------------------------------
# Reference and self-test
# --------------------------------------------------------------------------

def _reference(x, w1, b1, w2, b2):
    # Pure-JAX reference of the PyTorch forward.
    avg = jnp.mean(x, axis=(2, 3))                                  # (B, C)
    mx = jnp.max(x, axis=(2, 3))                                    # (B, C)

    def fc(v):
        h = jnp.maximum(v @ w1.T + b1, 0.0)
        return h @ w2.T + b2

    gate = jax.nn.sigmoid(fc(avg) + fc(mx))                         # (B, C)
    return x * gate[:, :, None, None]


if __name__ == "__main__":
    root = jax.random.PRNGKey(0)

    def make_params(key, C, ratio):
        Ch = max(1, C // ratio)
        kw1, kb1, kw2, kb2 = jax.random.split(key, 4)
        w1 = 0.1 * jax.random.normal(kw1, (Ch, C), dtype=jnp.float32)
        b1 = 0.1 * jax.random.normal(kb1, (Ch,), dtype=jnp.float32)
        w2 = 0.1 * jax.random.normal(kw2, (C, Ch), dtype=jnp.float32)
        b2 = 0.1 * jax.random.normal(kb2, (C,), dtype=jnp.float32)
        return w1, b1, w2, b2

    k1, k2, k3, k4 = jax.random.split(root, 4)

    # Test 1: lane-aligned spatial (16x16), fused-batch single-pass path.
    B, C, H, W = 8, 64, 16, 16
    x = jax.random.normal(k1, (B, C, H, W), dtype=jnp.float32)
    w1, b1, w2, b2 = make_params(k2, C, ratio=16)
    out = jax.block_until_ready(channel_attention(x, w1, b1, w2, b2))
    ref = _reference(x, w1, b1, w2, b2)
    assert out.shape == ref.shape
    assert jnp.allclose(out, ref, atol=2e-3, rtol=2e-3), "mismatch (aligned HW)"

    # Test 2: non-128-multiple spatial (14x14) — no wrapper pad / output slice.
    B2, C2, H2, W2 = 2, 32, 14, 14
    x2 = jax.random.normal(k3, (B2, C2, H2, W2), dtype=jnp.float32)
    w1b, b1b, w2b, b2b = make_params(k4, C2, ratio=8)
    out2 = jax.block_until_ready(channel_attention(x2, w1b, b1b, w2b, b2b))
    ref2 = _reference(x2, w1b, b1b, w2b, b2b)
    assert jnp.allclose(out2, ref2, atol=2e-3, rtol=2e-3), "mismatch (unaligned HW)"

    # Test 3: forced two-pass spatial-tiling path (large-C*HW / v7x fallback),
    # with a tail tile (196 = 128 + 68) exercising the masked reduction.
    out3 = jax.block_until_ready(channel_attention(
        x2, w1b, b1b, w2b, b2b, force_spatial_tiling=True, spatial_tile=128))
    assert jnp.allclose(out3, ref2, atol=2e-3, rtol=2e-3), "mismatch (two-pass)"

    # Test 4: bf16 HBM I/O with f32 in-kernel accumulation.
    xb = x.astype(jnp.bfloat16)
    outb = jax.block_until_ready(channel_attention(xb, w1, b1, w2, b2))
    refb = _reference(xb.astype(jnp.float32), w1, b1, w2, b2)
    assert outb.dtype == jnp.bfloat16
    assert jnp.allclose(outb.astype(jnp.float32), refb, atol=3e-2, rtol=3e-2), \
        "mismatch (bf16 I/O)"

    print("KERNEL_OK")
</pallas_src>

<mosaic_0001>
module attributes {stable_mosaic.version = 11 : i64} {
  func.func @_channel_attention_kernel(%arg0: i32, %arg1: memref<2x64x256xf32, #tpu.memory_space<vmem>>, %arg2: memref<64x4xf32, #tpu.memory_space<vmem>>, %arg3: memref<1x4xf32, #tpu.memory_space<vmem>>, %arg4: memref<4x64xf32, #tpu.memory_space<vmem>>, %arg5: memref<1x64xf32, #tpu.memory_space<vmem>>, %arg6: memref<2x64x256xf32, #tpu.memory_space<vmem>>) attributes {dimension_semantics = [#tpu.dimension_semantics<parallel>], iteration_bounds = array<i64: 4>, scalar_prefetch = 0 : i64, scratch_operands = 0 : i64, tpu.core_type = #tpu.core_type<tc>, window_params = [{transform_indices = @transform_0, window_bounds = array<i64: 2, 64, 256>}, {pipeline_mode = #tpu.pipeline_mode<synchronous>, transform_indices = @transform_1, window_bounds = array<i64: 64, 4>}, {pipeline_mode = #tpu.pipeline_mode<synchronous>, transform_indices = @transform_2, window_bounds = array<i64: 1, 4>}, {pipeline_mode = #tpu.pipeline_mode<synchronous>, transform_indices = @transform_3, window_bounds = array<i64: 4, 64>}, {pipeline_mode = #tpu.pipeline_mode<synchronous>, transform_indices = @transform_4, window_bounds = array<i64: 1, 64>}, {transform_indices = @transform_5, window_bounds = array<i64: 2, 64, 256>}]} {
    %c0 = arith.constant 0 : index
    %c0_0 = arith.constant 0 : index
    %c0_1 = arith.constant 0 : index
    %0 = vector.load %arg1[%c0, %c0_0, %c0_1] : memref<2x64x256xf32, #tpu.memory_space<vmem>>, vector<2x64x256xf32>
    %cst = arith.constant dense<0.000000e+00> : vector<2x64xf32>
    %1 = vector.multi_reduction <add>, %0, %cst [2] : vector<2x64x256xf32> to vector<2x64xf32>
    %cst_2 = arith.constant 3.906250e-03 : f32
    %2 = vector.broadcast %cst_2 : f32 to vector<2x64xf32>
    %3 = arith.mulf %1, %2 : vector<2x64xf32>
    %cst_3 = arith.constant dense<0xFF800000> : vector<2x64xf32>
    %4 = vector.multi_reduction <maximumf>, %0, %cst_3 [2] : vector<2x64x256xf32> to vector<2x64xf32>
    %c0_4 = arith.constant 0 : index
    %c0_5 = arith.constant 0 : index
    %5 = vector.load %arg2[%c0_4, %c0_5] : memref<64x4xf32, #tpu.memory_space<vmem>>, vector<64x4xf32>
    %cst_6 = arith.constant dense<0.000000e+00> : vector<2x4xf32>
    %6 = tpu.matmul %3, %5, %cst_6 {dimension_numbers = #tpu.dot_dimension_numbers<[1], [0], [0], [1], [0, 0, 1, 1], [], []>} : vector<2x64xf32>, vector<64x4xf32>, vector<2x4xf32> -> vector<2x4xf32>
    %c0_7 = arith.constant 0 : index
    %c0_8 = arith.constant 0 : index
    %7 = vector.load %arg3[%c0_7, %c0_8] : memref<1x4xf32, #tpu.memory_space<vmem>>, vector<1x4xf32>
    %8 = vector.broadcast %7 : vector<1x4xf32> to vector<2x4xf32>
    %9 = arith.addf %6, %8 : vector<2x4xf32>
    %cst_9 = arith.constant 0.000000e+00 : f32
    %10 = vector.broadcast %cst_9 : f32 to vector<2x4xf32>
    %11 = arith.maximumf %9, %10 : vector<2x4xf32>
    %c0_10 = arith.constant 0 : index
    %c0_11 = arith.constant 0 : index
    %12 = vector.load %arg4[%c0_10, %c0_11] : memref<4x64xf32, #tpu.memory_space<vmem>>, vector<4x64xf32>
    %cst_12 = arith.constant dense<0.000000e+00> : vector<2x64xf32>
    %13 = tpu.matmul %11, %12, %cst_12 {dimension_numbers = #tpu.dot_dimension_numbers<[1], [0], [0], [1], [0, 0, 1, 1], [], []>} : vector<2x4xf32>, vector<4x64xf32>, vector<2x64xf32> -> vector<2x64xf32>
    %c0_13 = arith.constant 0 : index
    %c0_14 = arith.constant 0 : index
    %14 = vector.load %arg5[%c0_13, %c0_14] : memref<1x64xf32, #tpu.memory_space<vmem>>, vector<1x64xf32>
    %15 = vector.broadcast %14 : vector<1x64xf32> to vector<2x64xf32>
    %16 = arith.addf %13, %15 : vector<2x64xf32>
    %c0_15 = arith.constant 0 : index
    %c0_16 = arith.constant 0 : index
    %17 = vector.load %arg2[%c0_15, %c0_16] : memref<64x4xf32, #tpu.memory_space<vmem>>, vector<64x4xf32>
    %cst_17 = arith.constant dense<0.000000e+00> : vector<2x4xf32>
    %18 = tpu.matmul %4, %17, %cst_17 {dimension_numbers = #tpu.dot_dimension_numbers<[1], [0], [0], [1], [0, 0, 1, 1], [], []>} : vector<2x64xf32>, vector<64x4xf32>, vector<2x4xf32> -> vector<2x4xf32>
    %c0_18 = arith.constant 0 : index
    %c0_19 = arith.constant 0 : index
    %19 = vector.load %arg3[%c0_18, %c0_19] : memref<1x4xf32, #tpu.memory_space<vmem>>, vector<1x4xf32>
    %20 = vector.broadcast %19 : vector<1x4xf32> to vector<2x4xf32>
    %21 = arith.addf %18, %20 : vector<2x4xf32>
    %cst_20 = arith.constant 0.000000e+00 : f32
    %22 = vector.broadcast %cst_20 : f32 to vector<2x4xf32>
    %23 = arith.maximumf %21, %22 : vector<2x4xf32>
    %c0_21 = arith.constant 0 : index
    %c0_22 = arith.constant 0 : index
    %24 = vector.load %arg4[%c0_21, %c0_22] : memref<4x64xf32, #tpu.memory_space<vmem>>, vector<4x64xf32>
    %cst_23 = arith.constant dense<0.000000e+00> : vector<2x64xf32>
    %25 = tpu.matmul %23, %24, %cst_23 {dimension_numbers = #tpu.dot_dimension_numbers<[1], [0], [0], [1], [0, 0, 1, 1], [], []>} : vector<2x4xf32>, vector<4x64xf32>, vector<2x64xf32> -> vector<2x64xf32>
    %c0_24 = arith.constant 0 : index
    %c0_25 = arith.constant 0 : index
    %26 = vector.load %arg5[%c0_24, %c0_25] : memref<1x64xf32, #tpu.memory_space<vmem>>, vector<1x64xf32>
    %27 = vector.broadcast %26 : vector<1x64xf32> to vector<2x64xf32>
    %28 = arith.addf %25, %27 : vector<2x64xf32>
    %29 = arith.addf %16, %28 : vector<2x64xf32>
    %30 = arith.negf %29 : vector<2x64xf32>
    %31 = math.exp %30 : vector<2x64xf32>
    %cst_26 = arith.constant 1.000000e+00 : f32
    %32 = vector.broadcast %cst_26 : f32 to vector<2x64xf32>
    %33 = arith.addf %32, %31 : vector<2x64xf32>
    %34 = arith.divf %32, %33 : vector<2x64xf32>
    %35 = vector.shape_cast %34 : vector<2x64xf32> to vector<2x64x1xf32>
    %36 = vector.broadcast %35 : vector<2x64x1xf32> to vector<2x64x256xf32>
    %37 = arith.mulf %0, %36 : vector<2x64x256xf32>
    %c0_27 = arith.constant 0 : index
    %c0_28 = arith.constant 0 : index
    %c0_29 = arith.constant 0 : index
    %38 = vector.load %arg6[%c0_27, %c0_28, %c0_29] : memref<2x64x256xf32, #tpu.memory_space<vmem>>, vector<2x64x256xf32>
    tpu.vector_store %arg6[%c0_27, %c0_28, %c0_29], %37 {strides = array<i32>} : memref<2x64x256xf32, #tpu.memory_space<vmem>>, vector<2x64x256xf32>,
    return
  }
  func.func @transform_0(%arg0: i32) -> (i32, i32, i32) {
    %c0_i32 = arith.constant 0 : i32
    %c0_i32_0 = arith.constant 0 : i32
    %c0_i32_1 = arith.constant 0 : i32
    return %arg0, %c0_i32, %c0_i32_0 : i32, i32, i32
  }
  func.func @transform_1(%arg0: i32) -> (i32, i32) {
    %c0_i32 = arith.constant 0 : i32
    %c0_i32_0 = arith.constant 0 : i32
    %c0_i32_1 = arith.constant 0 : i32
    return %c0_i32, %c0_i32_0 : i32, i32
  }
  func.func @transform_2(%arg0: i32) -> (i32, i32) {
    %c0_i32 = arith.constant 0 : i32
    %c0_i32_0 = arith.constant 0 : i32
    %c0_i32_1 = arith.constant 0 : i32
    return %c0_i32, %c0_i32_0 : i32, i32
  }
  func.func @transform_3(%arg0: i32) -> (i32, i32) {
    %c0_i32 = arith.constant 0 : i32
    %c0_i32_0 = arith.constant 0 : i32
    %c0_i32_1 = arith.constant 0 : i32
    return %c0_i32, %c0_i32_0 : i32, i32
  }
  func.func @transform_4(%arg0: i32) -> (i32, i32) {
    %c0_i32 = arith.constant 0 : i32
    %c0_i32_0 = arith.constant 0 : i32
    %c0_i32_1 = arith.constant 0 : i32
    return %c0_i32, %c0_i32_0 : i32, i32
  }
  func.func @transform_5(%arg0: i32) -> (i32, i32, i32) {
    %c0_i32 = arith.constant 0 : i32
    %c0_i32_0 = arith.constant 0 : i32
    %c0_i32_1 = arith.constant 0 : i32
    return %arg0, %c0_i32, %c0_i32_0 : i32, i32, i32
  }
}

</mosaic_0001>

<bundles_post_ra>
// kernel: tpu_custom_call.1
= control target key start
LH: loop header
LB: loop body
LE: loop exit
PB: predicated region body
PF: predicated region fallthrough
CT: control target
= control target key end

     0   :  { %10 = vsyncpa [#allocation3], 0  ;;  %s2013_s0 = inlined_call_operand.hbm [shape: f32[8,64,256], index: 0, kind: input, shape index: {}]   ;;  %s2014_s1 = inlined_call_operand.vmem [shape: f32[64,4], index: 1, kind: input, shape index: {}]   ;;  %s2015_s2 = inlined_call_operand.vmem [shape: f32[1,4], index: 2, kind: input, shape index: {}]   ;;  %s2016_s3 = inlined_call_operand.vmem [shape: f32[4,64], index: 3, kind: input, shape index: {}]   ;;  %s2017_s4 = inlined_call_operand.vmem [shape: f32[1,64], index: 4, kind: input, shape index: {}]   ;;  %s2018_s5 = inlined_call_operand.hbm [shape: f32[8,64,256], index: 5, kind: output, shape index: {}]  }
   0x1   :  { %12 = vsyncpa [#allocation3 + $0x1], 0 }
   0x2   :  { %13 = vsyncpa [#allocation4], 0 }
   0x3   :  { %15 = vsyncpa [#allocation4 + $0x1], 0  ;;  %s1467_s18 = smov 0   ;;  %s1469_s19 = smov 0  }
   0x4   :  { %s1471_s20 = smov 0   ;;  %s1473_s21 = smov 0  }
   0x5 LB: > { %s1488_s22 = sadd.s32 4294967295, %s1426_s21   ;;  %s1147_s23 = sadd.s32 4294967294, %s1426_s21   ;;  %s1426_s21 = sphi %s1473_s21, %s2060_s21   ;;  %s1422_s20 = sphi %s1471_s20, %s2059_s20   ;;  %s1418_s19 = sphi %s1469_s19, %s2058_s19   ;;  %s1414_s18 = sphi %s1467_s18, %s2057_s18  }
   0x6   : > { %s1492_s24 = sadd.s32 1, %s1426_s21   ;;  %s28_s25 = sadd.s32 1, %s1422_s20 }
   0x7   : > { %s25_s26 = ssub.s32 %s1426_s21, %s1492_s24  ;;  %p35_p0 = scmp.ne.s32.totalorder %s1422_s20, %s1418_s19 }
   0x8   : > { %p26_p1 = scmp.eq.s32.totalorder %s25_s26, 0  ;;  %p36_p2 = scmp.eq.s32.totalorder %s1426_s21, 0 }
   0x9   : > { %p41_p3 = scmp.ne.s32.totalorder %s1418_s19, %s1414_s18  ;;  %p42_p4 = scmp.eq.s32.totalorder %s1488_s22, 0 }
   0xa   : > { %s1504_s27 = scalar_select %p26_p1, %s1422_s20, %s28_s25  }
   0xb   : > { %p1506_p5 = por %p36_p2, %p35_p0  ;;  %p1510_p6 = por %p42_p4, %p41_p3 }
   0xc   : > { %p149_p7 = scmp.eq.s32.totalorder %s1488_s22, 3  ;;  %p155_p8 = scmp.eq.s32.totalorder %s1147_s23, 3 }
   0xd   : > { %p1285_p9 = scmp.lt.s32.totalorder %s1426_s21, 4  ;;  %s187_s7 = sand.u32 1, %s1422_s20  }
   0xe   : > { %p1516_p10 = por %p149_p7, %p35_p0  ;;  %p1520_p11 = por %p155_p8, %p41_p3 }
   0xf   : > { %s1173_s8 = sshll.u32 %s1426_s21, 12  ;;  %s1150_s9 = sshll.u32 %s187_s7, 8 }
  0x10   : > { %s2033_s30 = scalar_select %p1516_p10, 1, 0 }
  0x11   : > { %s2034_s6 = scalar_select %p1520_p11, 1, 0 }
  0x12   : > { %s1529_s12 = scalar_lea.hbm %s2013_s0, %s1173_s8  ;;  %s191_s13 = scalar_lea.vmem [#allocation2], %s1150_s9 }
  0x13   : > { %s199_s14 = sshll.u32 %s191_s13, 4  ;;  %p1533_p12 = pnand %p1285_p9, %p1506_p5  ;;  %s1537_s14 = int_to_ptr.vmem [resolvable:$true] %s199_s14 }
  0x14   : > { %s1539_s16 = scalar_lea.sflag [#allocation3], %s187_s7  ;;  %s1330_s17 = scalar_lea.hbm %s1529_s12, 4096 }
  0x15   : > { %p1331_p13 = scmp.ne.s32.totalorder %s1529_s12, %s1330_s17  ;;  %p1332_p0 = pneg %p1533_p12 }
  0x16   : > { %s1335_s26 = scalar_lea.hbm %s2013_s0, 16384  ;;  %p1336_p3 = scmp.lt.u32.totalorder %s1529_s12, %s2013_s0 }
  0x17   : > { %p1333_p1 = pnand %p1332_p0, %p1331_p13  ;;  %p1337_p4 = scmp.lt.u32.totalorder %s1335_s26, %s1330_s17 }
  0x18   : > { %p1339_p7 = scmp.lt.u32.totalorder %s1330_s17, %s1529_s12 }
  0x19   : > { %p1334_p2 = pneg %p1333_p1  ;;  %p1338_p5 = por %p1337_p4, %p1336_p3 }
  0x1b   : > { %p1340_p8 = por %p1339_p7, %p1338_p5 }
  0x1d   : > { %p1341_p9 = pnand %p1340_p8, %p1334_p2 }
  0x1f   : > { %1344 = shalt.err (!%p1341_p9)
}
  0x20   : > { %s1345_s7 = scalar_lea.vmem %s1537_s14, 4096  ;;  %s1428_s9 = smov [#allocation2]  }
  0x21   : > { %p1346_p13 = scmp.ne.s32.totalorder %s1537_s14, %s1345_s7  ;;  %s1350_s10 = sshll.u32 %s1428_s9, 4  ;;  %s1351_s10 = int_to_ptr.vmem [resolvable:$false] %s1350_s10 }
  0x22   : > { %s1352_s11 = scalar_lea.vmem %s1351_s10, 8192  ;;  %p1353_p10 = scmp.lt.s32.totalorder %s1537_s14, %s1351_s10 }
  0x23   : > { %p1348_p1 = pnand %p1346_p13, %p1332_p0  ;;  %p1354_p3 = scmp.lt.s32.totalorder %s1352_s11, %s1345_s7 }
  0x25   : > { %p1349_p11 = pneg %p1348_p1  ;;  %p1355_p4 = por %p1354_p3, %p1353_p10 }
  0x27   : > { %p1356_p5 = pnand %p1355_p4, %p1349_p11 }
  0x29   : > { %1359 = shalt.err (!%p1356_p5)
}
  0x2a   : > { %s1429_s13 = smov 256   ;;  %s1430_s17 = smov 16  }
  0x2b   : > { %1280 = dma.hbm_to_vmem [thread:$0]  (!%p1533_p12), %s1529_s12, 4096, %s1537_s14, %s1539_s16, %s1429_s13, %s1429_s13, %s1430_s17  }
  0x2c   : > { %p1154_p0 = scmp.ge.s32.totalorder %s1426_s21, 1  ;;  %p207_p2 = scmp.lt.s32.totalorder %s1426_s21, 5 }
  0x2e   : > { %p208_p7 = pnand %p1154_p0, %p207_p2 }
  0x30   : > { %211 = sbr.rel (%p208_p7) target bundleno = 891 (0x37b), region = 40 }
  0x37   : > { %s1570_s23 = sand.u32 1, %s1418_s19  }
  0x38   : > { %s1155_s25 = sshll.u32 %s1570_s23, 8  ;;  %s214_s26 = scalar_lea.sflag [#allocation3], %s1570_s23 }
  0x39   : > { %s1576_s28 = scalar_lea.vmem [#allocation2], %s1155_s25 }
  0x3a   : > { %1405 = dma.done.wait (%p1510_p6), %s214_s26, 4096  }
  0x3b   : > { %1407 = vsyncadd (%p1510_p6), %s214_s26, 4294963200  ;;  %v1583_v0 = vld [vmem:[%s1576_s28 + $0x80] sm:$0xff]  ;;  %v1586_v1 = vld [vmem:[%s1576_s28 + $0x88] sm:$0xff]  ;;  %v1431_v61 = vmov 0.0|0.0   ;;  %vm1432_vm0 = vmmov 0   ;;  %vm432_vm1 = vcmask 130112  }
  0x3c   : > { %v1589_v2 = vld [vmem:[%s1576_s28] sm:$0xff]  ;;  %v302_v3 = vadd.f32 %v1586_v1, %v1583_v0  ;;  %v1594_v4 = vld [vmem:[%s1576_s28 + $0x8] sm:$0xff]  ;;  %v1597_v5 = vld [vmem:[%s1576_s28 + $0x90] sm:$0xff]  ;;  %v366_v39 = vmax.f32 %v1583_v0, %v1586_v1  ;;  %1246 = vmatprep.subr.bf16.mxu0 %v1431_v61  ;;  %1258 = vmatprep.subr.bf16.mxu1 %v1431_v61  ;;  %vm439_vm2 = vcmask 195712   ;;  %vm446_vm3 = vcmask 261312   ;;  %s1901_s10 = scalar_lea.vmem [#allocation5], %s1155_s25 }
  0x3d   : > { %v1600_v6 = vld [vmem:[%s1576_s28 + $0x98] sm:$0xff]  ;;  %v278_v7 = vadd.f32 %v1594_v4, %v1589_v2  ;;  %v1605_v8 = vld [vmem:[%s1576_s28 + $0x10] sm:$0xff]  ;;  %v1615_v12 = vld [vmem:[%s1576_s28 + $0xa0] sm:$0xff]  ;;  %v342_v37 = vmax.f32 %v1589_v2, %v1594_v4  ;;  %vm453_vm4 = vcmask 326912   ;;  %vm460_vm5 = vcmask 392512   ;;  %s1175_s25 = sshll.u32 %s1488_s22, 12 }
  0x3e   : > { %v1608_v9 = vld [vmem:[%s1576_s28 + $0x18] sm:$0xff]  ;;  %303 = vadd.xlane.f32.xlu1 %v302_v3  ;;  %v305_v10 = vadd.f32 %v1600_v6, %v1597_v5  ;;  %v1618_v13 = vld [vmem:[%s1576_s28 + $0xa8] sm:$0xff]  ;;  %v1621_v14 = vld [vmem:[%s1576_s28 + $0x20] sm:$0xff]  ;;  %v369_v38 = vmax.f32 %v1597_v5, %v1600_v6  ;;  %vm467_vm6 = vcmask 458112   ;;  %vm474_vm7 = vcmask 523712   ;;  %s1074_s11 = sshll.u32 %s1901_s10, 4  ;;  %s1964_s26 = scalar_lea.hbm %s2018_s5, %s1175_s25  ;;  %s1966_s11 = int_to_ptr.vmem [resolvable:$true] %s1074_s11 }
  0x3f   : > { %279 = vadd.xlane.f32.xlu0 %v278_v7  ;;  %v281_v11 = vadd.f32 %v1608_v9, %v1605_v8  ;;  %v1624_v15 = vld [vmem:[%s1576_s28 + $0x28] sm:$0xff]  ;;  %v308_v16 = vadd.f32 %v1618_v13, %v1615_v12  ;;  %v1631_v18 = vld [vmem:[%s1576_s28 + $0xb0] sm:$0xff]  ;;  %v1634_v19 = vld [vmem:[%s1576_s28 + $0xb8] sm:$0xff]  ;;  %v345_v36 = vmax.f32 %v1605_v8, %v1608_v9  ;;  %v372_v46 = vmax.f32 %v1615_v12, %v1618_v13  ;;  %s1060_s22 = scalar_lea.sflag [#allocation4], %s1570_s23  ;;  %p2055_p10 = scmp.ne.s32.totalorder %s2033_s30, 0 }
  0x40   : > { %v284_v17 = vadd.f32 %v1624_v15, %v1621_v14  ;;  %2036 = vst [vmem:[#allocation8_spill] sm:$0xff] %v1631_v18  ;;  %2037 = vst [vmem:[#allocation9_spill] sm:$0xff] %v1634_v19  ;;  %v1637_v20 = vld [vmem:[%s1576_s28 + $0x30] sm:$0xff]  ;;  %v1640_v21 = vld [vmem:[%s1576_s28 + $0x38] sm:$0xff]  ;;  %v311_v22 = vadd.f32 %v1634_v19, %v1631_v18  ;;  %v348_v47 = vmax.f32 %v1621_v14, %v1624_v15  ;;  %vm515_vm8 = vcmask 1041409   ;;  %s1434_s29 = smov [#allocation5]  }
  0x41   : > { %v287_v23 = vadd.f32 %v1640_v21, %v1637_v20  ;;  %v1647_v24 = vld [vmem:[%s1576_s28 + $0xc0] sm:$0xff]  ;;  %v1650_v25 = vld [vmem:[%s1576_s28 + $0xc8] sm:$0xff]  ;;  %v1663_v30 = vld [vmem:[%s1576_s28 + $0xd0] sm:$0xff]  ;;  %v375_v54 = vmax.f32 %v1631_v18, %v1634_v19  ;;  %v351_v55 = vmax.f32 %v1637_v20, %v1640_v21  ;;  %vm517_vm9 = vcmask 523264   ;;  %s1364_s12 = sshll.u32 %s1434_s29, 4  ;;  %s1365_s12 = int_to_ptr.vmem [resolvable:$false] %s1364_s12 }
  0x42   : > { %306 = vadd.xlane.f32.xlu1 %v305_v10  ;;  %2038 = vst [vmem:[#allocation10_spill] sm:$0xff] %v1650_v25  ;;  %v1653_v26 = vld [vmem:[%s1576_s28 + $0x40] sm:$0xff]  ;;  %v1656_v27 = vld [vmem:[%s1576_s28 + $0x48] sm:$0xff]  ;;  %v314_v28 = vadd.f32 %v1650_v25, %v1647_v24  ;;  %2039 = vst [vmem:[#allocation11_spill] sm:$0xff] %v1663_v30  ;;  %v378_v58 = vmax.f32 %v1647_v24, %v1650_v25  ;;  %vm603_vm10 = vcmask 1043456   ;;  %vm599_vm11 = vcmask 31744   ;;  %p1367_p8 = scmp.lt.s32.totalorder %s1966_s11, %s1365_s12 }
  0x43   : > { %282 = vadd.xlane.f32.xlu0 %v281_v11  ;;  %v290_v29 = vadd.f32 %v1656_v27, %v1653_v26  ;;  %v1666_v31 = vld [vmem:[%s1576_s28 + $0xd8] sm:$0xff]  ;;  %v1669_v32 = vld [vmem:[%s1576_s28 + $0x50] sm:$0xff]  ;;  %v1687_v40 = vld [vmem:[%s1576_s28 + $0xe0] sm:$0xff]  ;;  %v354_v60 = vmax.f32 %v1653_v26, %v1656_v27  ;;  %s1366_s14 = scalar_lea.vmem %s1365_s12, 8192 }
  0x44   : > { %2040 = vst [vmem:[#allocation12_spill] sm:$0xff] %v1666_v31  ;;  %v1672_v33 = vld [vmem:[%s1576_s28 + $0x58] sm:$0xff]  ;;  %v317_v34 = vadd.f32 %v1666_v31, %v1663_v30  ;;  %2041 = vst [vmem:[#allocation13_spill] sm:$0xff] %v1687_v40  ;;  %v1690_v41 = vld [vmem:[%s1576_s28 + $0xe8] sm:$0xff]  ;;  %v381_v3 = vmax.f32 %v1663_v30, %v1666_v31 }
  0x45   : > { %v293_v35 = vadd.f32 %v1672_v33, %v1669_v32  ;;  %2042 = vst [vmem:[#allocation14_spill] sm:$0xff] %v1690_v41  ;;  %v1693_v42 = vld [vmem:[%s1576_s28 + $0x60] sm:$0xff]  ;;  %v1696_v43 = vld [vmem:[%s1576_s28 + $0x68] sm:$0xff]  ;;  %v320_v44 = vadd.f32 %v1690_v41, %v1687_v40  ;;  %v1707_v48 = vld [vmem:[%s1576_s28 + $0xf0] sm:$0xff]  ;;  %v357_v10 = vmax.f32 %v1669_v32, %v1672_v33 }
  0x46   : > { %309 = vadd.xlane.f32.xlu1 %v308_v16  ;;  %v296_v45 = vadd.f32 %v1696_v43, %v1693_v42  ;;  %2043 = vst [vmem:[#allocation15_spill] sm:$0xff] %v1707_v48  ;;  %v1710_v49 = vld [vmem:[%s1576_s28 + $0xf8] sm:$0xff]  ;;  %v1713_v50 = vld [vmem:[%s1576_s28 + $0x70] sm:$0xff]  ;;  %v390_v56 = vld [vmem:[%s2014_s1] sm:$0xff] }
  0x47   : > { %285 = vadd.xlane.f32.xlu0 %v284_v17  ;;  %2044 = vst [vmem:[#allocation16_spill] sm:$0xff] %v1710_v49  ;;  %v1716_v51 = vld [vmem:[%s1576_s28 + $0x78] sm:$0xff]  ;;  %v323_v52 = vadd.f32 %v1710_v49, %v1707_v48  ;;  %v391_v57 = vld [vmem:[%s2014_s1 + $0x8] sm:$0xff]  ;;  %v392_v62 = vld [vmem:[%s2014_s1 + $0x10] sm:$0xff]  ;;  %v384_v17 = vmax.f32 %v1687_v40, %v1690_v41  ;;  %s1360_s28 = scalar_lea.vmem %s1966_s11, 4096 }
  0x48   : > { %v299_v53 = vadd.f32 %v1716_v51, %v1713_v50  ;;  %v1247_v59 = vpack.c.bf16 %v391_v57, %v390_v56  ;;  %v393_v63 = vld [vmem:[%s2014_s1 + $0x18] sm:$0xff]  ;;  %v394_v11 = vld [vmem:[%s2014_s1 + $0x20] sm:$0xff]  ;;  %v395_v16 = vld [vmem:[%s2014_s1 + $0x28] sm:$0xff]  ;;  %v421_v56 = vlaneseq  ;;  %p1361_p6 = scmp.ne.s32.totalorder %s1966_s11, %s1360_s28  ;;  %p1368_p9 = scmp.lt.s32.totalorder %s1366_s14, %s1360_s28 }
  0x49   : > { %v1250_v7 = vpack.c.bf16 %v393_v63, %v392_v62 }
  0x4a   : > { %312 = vadd.xlane.f32.xlu1 %v311_v22  ;;  %1248 = vmatpush3.bf16.msra.mxu0 %v1247_v59  ;;  %v1253_v22 = vpack.c.bf16 %v395_v16, %v394_v11  ;;  %p1362_p11 = pnand %p1361_p6, %p2055_p10  ;;  %p1369_p13 = por %p1368_p9, %p1367_p8 }
  0x4b   : > { %288 = vadd.xlane.f32.xlu0 %v287_v23  ;;  %1249 = vmatprep.subr.bf16.mxu0 %v1431_v61  ;;  %v360_v23 = vmax.f32 %v1693_v42, %v1696_v43 }
  0x4c   : > { %1260 = vmatpush3.bf16.msra.mxu1 %v1247_v59  ;;  %v422_v59 = vand.u32 127, %v421_v56  ;;  %p1363_p12 = pneg %p1362_p11 }
  0x4d   : > { %1261 = vmatprep.subr.bf16.mxu1 %v1431_v61 }
  0x4e   : > { %315 = vadd.xlane.f32.xlu1 %v314_v28  ;;  %1251 = vmatpush3.bf16.msra.mxu0 %v1250_v7  ;;  %v396_v28 = vld [vmem:[%s2014_s1 + $0x30] sm:$0xff]  ;;  %v427_v63 = vadd.s32 4294967288, %v422_v59  ;;  %v455_v11 = vadd.s32 4294967256, %v422_v59  ;;  %v469_v19 = vadd.s32 4294967240, %v422_v59  ;;  %p1370_p1 = pnand %p1369_p13, %p1363_p12 }
  0x4f   : > { %291 = vadd.xlane.f32.xlu0 %v290_v29  ;;  %1252 = vmatprep.subr.bf16.mxu0 %v1431_v61  ;;  %v397_v29 = vld [vmem:[%s2014_s1 + $0x38] sm:$0xff] }
  0x50   : > { %1263 = vmatpush3.bf16.msra.mxu1 %v1250_v7  ;;  %v441_v7 = vadd.s32 4294967272, %v422_v59 }
  0x51   : > { %1264 = vmatprep.subr.bf16.mxu1 %v1431_v61 }
  0x52   : > { %318 = vadd.xlane.f32.xlu1 %v317_v34  ;;  %1254 = vmatpush3.bf16.msra.mxu0 %v1253_v22  ;;  %v387_v34 = vmax.f32 %v1707_v48, %v1710_v49 }
  0x53   : > { %294 = vadd.xlane.f32.xlu0 %v293_v35  ;;  %1255 = vmatprep.subr.bf16.mxu0 %v1431_v61  ;;  %v1256_v35 = vpack.c.bf16 %v397_v29, %v396_v28  ;;  %v462_v29 = vadd.s32 4294967248, %v422_v59 }
  0x54   : > { %1266 = vmatpush3.bf16.msra.mxu1 %v1253_v22 }
  0x55   : > { %1267 = vmatprep.subr.bf16.mxu1 %v1431_v61  ;;  %v1774_v61 = vshrl.u32 %v421_v56, 7 }
  0x56   : > { %346 = vmax.xlane.f32.xlu1 %v345_v36  ;;  %v363_v36 = vmax.f32 %v1713_v50, %v1716_v51  ;;  %1257 = vmatpush3.bf16.msra.mxu0 %v1256_v35 }
  0x57   : > { %343 = vmax.xlane.f32.xlu0 %v342_v37  ;;  %v2020_v37 = vmov 0.0   ;;  %v1798_v49 = vsub.s32 %v455_v11, %v1774_v61  ;;  %v1801_v40 = vsub.s32 %v462_v29, %v1774_v61 }
  0x58   : > { %1269 = vmatpush3.bf16.msra.mxu1 %v1256_v35  ;;  %1214 = vmatprep.mubr.msk.f32.mxu0 %vm1432_vm0, %v2020_v37  ;;  %v1792_v35 = vsub.s32 %v441_v7, %v1774_v61 }
  0x59   : > { %1238 = vmatprep.mubr.msk.f32.mxu1 %vm1432_vm0, %v2020_v37  ;;  %1217 = vmatprep.subr.mxu0 %v2020_v37 }
  0x5a   : > { %370 = vmax.xlane.f32.xlu1 %v369_v38  ;;  %1241 = vmatprep.subr.mxu1 %v2020_v37 }
  0x5b   : > { %367 = vmax.xlane.f32.xlu0 %v366_v39 }
  0x5e   : > { %321 = vadd.xlane.f32.xlu1 %v320_v44 }
  0x5f   : > { %297 = vadd.xlane.f32.xlu0 %v296_v45 }
  0x62   : > { %373 = vmax.xlane.f32.xlu1 %v372_v46 }
  0x63   : > { %349 = vmax.xlane.f32.xlu0 %v348_v47 }
  0x66   : > { %324 = vadd.xlane.f32.xlu1 %v323_v52 }
  0x67   : > { %300 = vadd.xlane.f32.xlu0 %v299_v53 }
  0x6a   : > { %376 = vmax.xlane.f32.xlu1 %v375_v54 }
  0x6b   : > { %352 = vmax.xlane.f32.xlu0 %v351_v55 }
  0x6e   : > { %379 = vmax.xlane.f32.xlu1 %v378_v58 }
  0x6f   : > { %355 = vmax.xlane.f32.xlu0 %v354_v60 }
  0x72   : > { %382 = vmax.xlane.f32.xlu1 %v381_v3  ;;  %v434_v3 = vadd.s32 4294967280, %v422_v59 }
  0x73   : > { %358 = vmax.xlane.f32.xlu0 %v357_v10  ;;  %v448_v10 = vadd.s32 4294967264, %v422_v59 }
  0x74   : > { %v1789_v28 = vsub.s32 %v434_v3, %v1774_v61 }
  0x76   : > { %385 = vmax.xlane.f32.xlu1 %v384_v17  ;;  %v1781_v17 = vsub.s32 %v422_v59, %v1774_v61 }
  0x77   : > { %361 = vmax.xlane.f32.xlu0 %v360_v23  ;;  %v1786_v23 = vsub.s32 %v427_v63, %v1774_v61 }
  0x7a   : > { %388 = vmax.xlane.f32.xlu1 %v387_v34 }
  0x7b   : > { %364 = vmax.xlane.f32.xlu0 %v363_v36  ;;  %v1795_v36 = vsub.s32 %v448_v10, %v1774_v61 }
  0xcb   : > { %v304_v38 = vpop.xlane.xlu1 %303 }
  0xcc   : > { %v280_v39 = vpop.xlane.xlu0 %279  ;;  %v334_v48 = vmul.f32 0.00390625, %v304_v38 }
  0xcf   : > { %v307_v44 = vpop.xlane.xlu1 %306 }
  0xd0   : > { %v283_v45 = vpop.xlane.xlu0 %282  ;;  %v335_v34 = vmul.f32 0.00390625, %v307_v44  ;;  %v326_v44 = vmul.f32 0.00390625, %v280_v39  ;;  %v479_v39 = vrot.slane %v334_v48, %v1781_v17 }
  0xd1   : > { %v327_v56 = vmul.f32 0.00390625, %v283_v45 }
  0xd2   : > { %v483_v10 = vrot.slane %v335_v34, %v1786_v23  ;;  %v1820_v34 = vsub.s32 %v469_v19, %v1774_v61 }
  0xd3   : > { %v310_v46 = vpop.xlane.xlu1 %309  ;;  %v431_v11 = vrot.slane %v327_v56, %v1786_v23 }
  0xd4   : > { %v286_v47 = vpop.xlane.xlu0 %285  ;;  %v336_v37 = vmul.f32 0.00390625, %v310_v46 }
  0xd5   : > { %v328_v3 = vmul.f32 0.00390625, %v286_v47 }
  0xd6   : > { %v488_v18 = vrot.slane %v336_v37, %v1789_v28  ;;  %v484_v37 = vsel %vm432_vm1, %v483_v10, %v479_v39 }
  0xd7   : > { %v313_v52 = vpop.xlane.xlu1 %312 }
  0xd8   : > { %v289_v53 = vpop.xlane.xlu0 %288  ;;  %v337_v31 = vmul.f32 0.00390625, %v313_v52 }
  0xd9   : > { %v329_v41 = vmul.f32 0.00390625, %v289_v53  ;;  %v438_v53 = vrot.slane %v328_v3, %v1789_v28 }
  0xdb   : > { %v316_v54 = vpop.xlane.xlu1 %315 }
  0xdc   : > { %v292_v55 = vpop.xlane.xlu0 %291  ;;  %v338_v7 = vmul.f32 0.00390625, %v316_v54  ;;  %v493_v54 = vrot.slane %v337_v31, %v1792_v35  ;;  %v489_v31 = vsel %vm439_vm2, %v488_v18, %v484_v37 }
  0xdd   : > { %v330_v45 = vmul.f32 0.00390625, %v292_v55  ;;  %v426_v55 = vrot.slane %v326_v44, %v1781_v17 }
  0xde   : > { %v498_v59 = vrot.slane %v338_v7, %v1795_v36  ;;  %v494_v44 = vsel %vm446_vm3, %v493_v54, %v489_v31  ;;  %v2045_v31 = vmov 0.0  }
  0xdf   : > { %v319_v57 = vpop.xlane.xlu1 %318 }
  0xe0   : > { %v295_v58 = vpop.xlane.xlu0 %294  ;;  %v339_v46 = vmul.f32 0.00390625, %v319_v57  ;;  %v445_v57 = vrot.slane %v329_v41, %v1792_v35 }
  0xe1   : > { %v331_v38 = vmul.f32 0.00390625, %v295_v58  ;;  %v452_v58 = vrot.slane %v330_v45, %v1795_v36 }
  0xe2   : > { %v503_v48 = vrot.slane %v339_v46, %v1798_v49  ;;  %v499_v46 = vsel %vm453_vm4, %v498_v59, %v494_v44 }
  0xe3   : > { %v1772_v60 = vpop.xlane.xlu1 %346  ;;  %v459_v56 = vrot.slane %v331_v38, %v1798_v49 }
  0xe4   : > { %v1776_v62 = vpop.xlane.xlu0 %343  ;;  %v504_v38 = vsel %vm460_vm5, %v503_v48, %v499_v46  ;;  %v700_v44 = vrot.slane %v1772_v60, %v1786_v23 }
  0xe7   : > { %v1778_v16 = vpop.xlane.xlu1 %370 }
  0xe8   : > { %v1783_v22 = vpop.xlane.xlu0 %367 }
  0xeb   : > { %v322_v63 = vpop.xlane.xlu1 %321 }
  0xec   : > { %v298_v30 = vpop.xlane.xlu0 %297  ;;  %v340_v47 = vmul.f32 0.00390625, %v322_v63 }
  0xed   : > { %v332_v29 = vmul.f32 0.00390625, %v298_v30  ;;  %v433_v30 = vsel %vm432_vm1, %v431_v11, %v426_v55 }
  0xee   : > { %v508_v41 = vrot.slane %v340_v47, %v1801_v40  ;;  %v440_v3 = vsel %vm439_vm2, %v438_v53, %v433_v30 }
  0xef   : > { %v1806_v52 = vpop.xlane.xlu1 %373  ;;  %v466_v7 = vrot.slane %v332_v29, %v1801_v40  ;;  %v447_v19 = vsel %vm446_vm3, %v445_v57, %v440_v3 }
  0xf0   : > { %v1811_v25 = vpop.xlane.xlu0 %349  ;;  %v454_v18 = vsel %vm453_vm4, %v452_v58, %v447_v19  ;;  %v509_v53 = vsel %vm467_vm6, %v508_v41, %v504_v38  ;;  %v739_v41 = vrot.slane %v1778_v16, %v1786_v23 }
  0xf1   : > { %v461_v39 = vsel %vm460_vm5, %v459_v56, %v454_v18 }
  0xf2   : > { %v468_v55 = vsel %vm467_vm6, %v466_v7, %v461_v39  ;;  %v696_v7 = vrot.slane %v1776_v62, %v1781_v17 }
  0xf3   : > { %v325_v63 = vpop.xlane.xlu1 %324 }
  0xf4   : > { %v341_v10 = vmul.f32 0.00390625, %v325_v63  ;;  %v301_v45 = vpop.xlane.xlu0 %300  ;;  %v735_v63 = vrot.slane %v1783_v22, %v1781_v17  ;;  %v701_v17 = vsel %vm432_vm1, %v700_v44, %v696_v7 }
  0xf5   : > { %v333_v11 = vmul.f32 0.00390625, %v301_v45  ;;  %v705_v45 = vrot.slane %v1811_v25, %v1789_v28 }
  0xf6   : > { %v513_v47 = vrot.slane %v341_v10, %v1820_v34  ;;  %v744_v10 = vrot.slane %v1806_v52, %v1789_v28 }
  0xf7   : > { %v473_v54 = vrot.slane %v333_v11, %v1820_v34  ;;  %v377_v29 = vpop.xlane.xlu1 %376  ;;  %v740_v11 = vsel %vm432_vm1, %v739_v41, %v735_v63 }
  0xf8   : > { %v353_v57 = vpop.xlane.xlu0 %352  ;;  %v514_v59 = vsel %vm474_vm7, %v513_v47, %v509_v53  ;;  %v749_v19 = vrot.slane %v377_v29, %v1792_v35  ;;  %v745_v52 = vsel %vm439_vm2, %v744_v10, %v740_v11 }
  0xf9   : > { %v475_v37 = vsel %vm474_vm7, %v473_v54, %v468_v55  ;;  %v710_v16 = vrot.slane %v353_v57, %v1792_v35  ;;  %v706_v35 = vsel %vm439_vm2, %v705_v45, %v701_v17 }
  0xfa   : > { %v516_v58 = vsel %vm515_vm8, %v514_v59, %v475_v37  ;;  %v750_v18 = vsel %vm446_vm3, %v749_v19, %v745_v52 }
  0xfb   : > { %1215 = vmatmul.mubr.msk.f32.vlgmr.msra.gmra.mrb[0].mxu0 %vm517_vm9, %v516_v58  ;;  %v380_v48 = vpop.xlane.xlu1 %379  ;;  %v711_v47 = vsel %vm446_vm3, %v710_v16, %v706_v35  ;;  %v1159_v16 = vld [vmem:[%s2017_s4] ss:$0 sm:$0xff] }
  0xfc   : > { %v356_v30 = vpop.xlane.xlu0 %355  ;;  %1219 = vmatprep.mubr.msk.f32.mxu0 %vm1432_vm0, %v2045_v31  ;;  %v754_v46 = vrot.slane %v380_v48, %v1795_v36 }
  0xfd   : > { %v715_v60 = vrot.slane %v356_v30, %v1795_v36  ;;  %v591_v30 = vld [vmem:[%s2016_s3] sm:$0xf] }
  0xfe   : > { %v755_v36 = vsel %vm453_vm4, %v754_v46, %v750_v18  ;;  %1218 = vmatpush3.msk.msra.mxu0 %vm603_vm10, %v591_v30  ;;  %v1270_v46 = vadd.f32 %v1159_v16, %v1159_v16  ;;  %v962_v18 = vsub.s32 1, %v1774_v61  ;;  %v2052_v16 = vld [vmem:[#allocation12_spill] sm:$0xff] }
  0xff   : > { %v383_v56 = vpop.xlane.xlu1 %382  ;;  %v716_v53 = vsel %vm453_vm4, %v715_v60, %v711_v47 }
 0x100   : > { %v359_v3 = vpop.xlane.xlu0 %358  ;;  %v759_v23 = vrot.slane %v383_v56, %v1798_v49 }
 0x101   : > { %v720_v25 = vrot.slane %v359_v3, %v1798_v49 }
 0x102   : > { %v760_v54 = vsel %vm460_vm5, %v759_v23, %v755_v36 }
 0x103   : > { %v386_v22 = vpop.xlane.xlu1 %385  ;;  %v721_v55 = vsel %vm460_vm5, %v720_v25, %v716_v53  ;;  %v927_v25 = vsub.s32 0, %v1774_v61 }
 0x104   : > { %v362_v62 = vpop.xlane.xlu0 %361  ;;  %v764_v28 = vrot.slane %v386_v22, %v1801_v40 }
 0x105   : > { %v725_v38 = vrot.slane %v362_v62, %v1801_v40 }
 0x106   : > { %v765_v57 = vsel %vm467_vm6, %v764_v28, %v760_v54 }
 0x107   : > { %v389_v39 = vpop.xlane.xlu1 %388  ;;  %v726_v40 = vsel %vm467_vm6, %v725_v38, %v721_v55 }
 0x108   : > { %v769_v29 = vrot.slane %v389_v39, %v1820_v34  ;;  %v365_v49 = vpop.xlane.xlu0 %364 }
 0x109   : > { %v730_v59 = vrot.slane %v365_v49, %v1820_v34  ;;  %v1157_v34 = vld [vmem:[%s2015_s2] ss:$0 sm:$0xff] }
 0x10a   : > { %v770_v37 = vsel %vm474_vm7, %v769_v29, %v765_v57 }
 0x10b   : > { %v731_v58 = vsel %vm474_vm7, %v730_v59, %v726_v40 }
 0x10c   : > { %v771_v48 = vsel %vm515_vm8, %v770_v37, %v731_v58 }
 0x10d   : > { %1239 = vmatmul.mubr.msk.f32.vlgmr.msra.gmra.mrb[0].mxu1 %vm517_vm9, %v771_v48 }
 0x10e   : > { %1243 = vmatprep.mubr.msk.f32.mxu1 %vm1432_vm0, %v2045_v31  ;;  %1242 = vmatpush3.msk.msra.mxu1 %vm603_vm10, %v591_v30 }
 0x1ce   : > { %v586_v56 = vpop.f32.mrb[0].mxu0 }
 0x1cf   : > { %v587_v41 = vadd.f32 %v1157_v34, %v586_v56  ;;  %v1216_v63 = vpop.f32.mrb[1].mxu0  ;;  %v2046_v56 = vld [vmem:[#allocation10_spill] sm:$0xff] }
 0x1d0   : > { %v2047_v63 = vld [vmem:[#allocation8_spill] sm:$0xff] }
 0x1d1   : > { %v590_v3 = vmax.f32 %v587_v41, 0.0 }
 0x1d3   : > { %1220 = vmatmul.mubr.msk.f32.vlgmr.msra.gmra.mrb[2].mxu0 %vm599_vm11, %v590_v3  ;;  %v2048_v3 = vld [vmem:[#allocation9_spill] sm:$0xff] }
 0x1e0   : > { %v840_v44 = vpop.f32.mrb[0].mxu1 }
 0x1e1   : > { %v841_v7 = vadd.f32 %v1157_v34, %v840_v44  ;;  %v1240_v31 = vpop.f32.mrb[1].mxu1 }
 0x1e2   : > { %v2050_v31 = vld [vmem:[#allocation14_spill] sm:$0xff] }
 0x1e3   : > { %v844_v10 = vmax.f32 %v841_v7, 0.0 }
 0x1e5   : > { %1244 = vmatmul.mubr.msk.f32.vlgmr.msra.gmra.mrb[2].mxu1 %vm599_vm11, %v844_v10 }
 0x2a6   : > { %v673_v45 = vpop.f32.mrb[2].mxu0 }
 0x2a7   : > { %v1221_v19 = vpop.f32.mrb[3].mxu0  ;;  %v1271_v22 = vadd.f32 %v1270_v46, %v673_v45  ;;  %v2051_v45 = vld [vmem:[#allocation11_spill] sm:$0xff] }
 0x2b8   : > { %v914_v11 = vpop.f32.mrb[2].mxu1 }
 0x2b9   : > { %v1272_v60 = vadd.f32 %v1271_v22, %v914_v11  ;;  %v1245_v23 = vpop.f32.mrb[3].mxu1  ;;  %v2053_v11 = vld [vmem:[#allocation15_spill] sm:$0xff] }
 0x2ba   : > { %v2054_v23 = vld [vmem:[#allocation16_spill] sm:$0xff] }
 0x2bb   : > { %v1165_v62 = vmul.f32 -1.442695, %v1272_v60 }
 0x2bd   : > { %1326 = vpow2.f32 %v1165_v62 }
 0x2c7   : > { %v1327_v17 = vpop.eup %1326 }
 0x2c8   : > { %v922_v52 = vadd.f32 1.0, %v1327_v17 }
 0x2ca   : > { %1328 = vrcp.f32 %v922_v52 }
 0x2d4   : > { %v1329_v28 = vpop.eup %1328 }
 0x2d5   : > { %v928_v35 = vrot.slane %v1329_v28, %v927_v25  ;;  %v963_v38 = vrot.slane %v1329_v28, %v962_v18 }
 0x2d7   : > { %934 = vbcast.lane.b32.xlu1 %v928_v35, 264  ;;  %930 = vbcast.lane.b32.xlu0 %v928_v35, 256 }
 0x2db   : > { %938 = vbcast.lane.b32.xlu1 %v928_v35, 272  ;;  %946 = vbcast.lane.b32.xlu0 %v928_v35, 288 }
 0x2df   : > { %942 = vbcast.lane.b32.xlu1 %v928_v35, 280  ;;  %954 = vbcast.lane.b32.xlu0 %v928_v35, 304 }
 0x2e3   : > { %950 = vbcast.lane.b32.xlu1 %v928_v35, 296  ;;  %965 = vbcast.lane.b32.xlu0 %v963_v38, 256 }
 0x2e7   : > { %958 = vbcast.lane.b32.xlu1 %v928_v35, 312  ;;  %973 = vbcast.lane.b32.xlu0 %v963_v38, 272 }
 0x2eb   : > { %969 = vbcast.lane.b32.xlu1 %v963_v38, 264  ;;  %981 = vbcast.lane.b32.xlu0 %v963_v38, 288 }
 0x2ef   : > { %977 = vbcast.lane.b32.xlu1 %v963_v38, 280  ;;  %989 = vbcast.lane.b32.xlu0 %v963_v38, 304 }
 0x2f3   : > { %985 = vbcast.lane.b32.xlu1 %v963_v38, 296 }
 0x2f7   : > { %993 = vbcast.lane.b32.xlu1 %v963_v38, 312 }
 0x349   : > { %v935_v47 = vpop.permute.xlu1 %934  ;;  %v931_v36 = vpop.permute.xlu0 %930 }
 0x34a   : > { %v997_v39 = vmul.f32 %v935_v47, %v1605_v8  ;;  %v998_v61 = vmul.f32 %v935_v47, %v1608_v9  ;;  %v995_v53 = vmul.f32 %v931_v36, %v1589_v2  ;;  %v996_v54 = vmul.f32 %v931_v36, %v1594_v4 }
 0x34c   : > { %1029 = vst [vmem:[%s1901_s10 + $0x10] sm:$0xff] %v997_v39  ;;  %1030 = vst [vmem:[%s1901_s10 + $0x18] sm:$0xff] %v998_v61 }
 0x34d   : > { %1027 = vst [vmem:[%s1901_s10] sm:$0xff] %v995_v53  ;;  %1028 = vst [vmem:[%s1901_s10 + $0x8] sm:$0xff] %v996_v54  ;;  %v939_v8 = vpop.permute.xlu1 %938  ;;  %v947_v2 = vpop.permute.xlu0 %946 }
 0x34e   : > { %v999_v4 = vmul.f32 %v939_v8, %v1621_v14  ;;  %v1000_v9 = vmul.f32 %v939_v8, %v1624_v15  ;;  %v1003_v29 = vmul.f32 %v947_v2, %v1653_v26  ;;  %v1004_v49 = vmul.f32 %v947_v2, %v1656_v27 }
 0x350   : > { %1031 = vst [vmem:[%s1901_s10 + $0x20] sm:$0xff] %v999_v4  ;;  %1032 = vst [vmem:[%s1901_s10 + $0x28] sm:$0xff] %v1000_v9 }
 0x351   : > { %1035 = vst [vmem:[%s1901_s10 + $0x40] sm:$0xff] %v1003_v29  ;;  %1036 = vst [vmem:[%s1901_s10 + $0x48] sm:$0xff] %v1004_v49  ;;  %v943_v55 = vpop.permute.xlu1 %942  ;;  %v955_v57 = vpop.permute.xlu0 %954 }
 0x352   : > { %v1001_v59 = vmul.f32 %v943_v55, %v1637_v20  ;;  %v1002_v14 = vmul.f32 %v943_v55, %v1640_v21  ;;  %v1007_v15 = vmul.f32 %v955_v57, %v1693_v42  ;;  %v1008_v26 = vmul.f32 %v955_v57, %v1696_v43 }
 0x354   : > { %1033 = vst [vmem:[%s1901_s10 + $0x30] sm:$0xff] %v1001_v59  ;;  %1034 = vst [vmem:[%s1901_s10 + $0x38] sm:$0xff] %v1002_v14 }
 0x355   : > { %1039 = vst [vmem:[%s1901_s10 + $0x60] sm:$0xff] %v1007_v15  ;;  %1040 = vst [vmem:[%s1901_s10 + $0x68] sm:$0xff] %v1008_v26  ;;  %v951_v27 = vpop.permute.xlu1 %950  ;;  %v966_v40 = vpop.permute.xlu0 %965 }
 0x356   : > { %v1005_v37 = vmul.f32 %v951_v27, %v1669_v32  ;;  %v1006_v20 = vmul.f32 %v951_v27, %v1672_v33  ;;  %v1011_v21 = vmul.f32 %v966_v40, %v1583_v0  ;;  %v1012_v42 = vmul.f32 %v966_v40, %v1586_v1 }
 0x358   : > { %1037 = vst [vmem:[%s1901_s10 + $0x50] sm:$0xff] %v1005_v37  ;;  %1038 = vst [vmem:[%s1901_s10 + $0x58] sm:$0xff] %v1006_v20 }
 0x359   : > { %1043 = vst [vmem:[%s1901_s10 + $0x80] sm:$0xff] %v1011_v21  ;;  %1044 = vst [vmem:[%s1901_s10 + $0x88] sm:$0xff] %v1012_v42  ;;  %v959_v43 = vpop.permute.xlu1 %958  ;;  %v974_v58 = vpop.permute.xlu0 %973 }
 0x35a   : > { %v1009_v48 = vmul.f32 %v959_v43, %v1713_v50  ;;  %v1010_v32 = vmul.f32 %v959_v43, %v1716_v51  ;;  %v1015_v33 = vmul.f32 %v974_v58, %v1615_v12  ;;  %v1016_v0 = vmul.f32 %v974_v58, %v1618_v13 }
 0x35c   : > { %1041 = vst [vmem:[%s1901_s10 + $0x70] sm:$0xff] %v1009_v48  ;;  %1042 = vst [vmem:[%s1901_s10 + $0x78] sm:$0xff] %v1010_v32 }
 0x35d   : > { %1047 = vst [vmem:[%s1901_s10 + $0xa0] sm:$0xff] %v1015_v33  ;;  %1048 = vst [vmem:[%s1901_s10 + $0xa8] sm:$0xff] %v1016_v0  ;;  %v970_v1 = vpop.permute.xlu1 %969  ;;  %v982_v30 = vpop.permute.xlu0 %981 }
 0x35e   : > { %v1013_v34 = vmul.f32 %v970_v1, %v1597_v5  ;;  %v1014_v50 = vmul.f32 %v970_v1, %v1600_v6  ;;  %v1019_v51 = vmul.f32 %v982_v30, %v1647_v24  ;;  %v1020_v12 = vmul.f32 %v982_v30, %v2046_v56  ;;  %v2049_v6 = vld [vmem:[#allocation13_spill] sm:$0xff] }
 0x360   : > { %1045 = vst [vmem:[%s1901_s10 + $0x90] sm:$0xff] %v1013_v34  ;;  %1046 = vst [vmem:[%s1901_s10 + $0x98] sm:$0xff] %v1014_v50 }
 0x361   : > { %1051 = vst [vmem:[%s1901_s10 + $0xc0] sm:$0xff] %v1019_v51  ;;  %1052 = vst [vmem:[%s1901_s10 + $0xc8] sm:$0xff] %v1020_v12  ;;  %v978_v13 = vpop.permute.xlu1 %977  ;;  %v990_v41 = vpop.permute.xlu0 %989 }
 0x362   : > { %v1017_v5 = vmul.f32 %v978_v13, %v2047_v63  ;;  %v1018_v44 = vmul.f32 %v978_v13, %v2048_v3  ;;  %v1023_v7 = vmul.f32 %v990_v41, %v2049_v6  ;;  %v1024_v24 = vmul.f32 %v990_v41, %v2050_v31 }
 0x364   : > { %1049 = vst [vmem:[%s1901_s10 + $0xb0] sm:$0xff] %v1017_v5  ;;  %1050 = vst [vmem:[%s1901_s10 + $0xb8] sm:$0xff] %v1018_v44 }
 0x365   : > { %1055 = vst [vmem:[%s1901_s10 + $0xe0] sm:$0xff] %v1023_v7  ;;  %1056 = vst [vmem:[%s1901_s10 + $0xe8] sm:$0xff] %v1024_v24  ;;  %v986_v10 = vpop.permute.xlu1 %985 }
 0x366   : > { %v1021_v19 = vmul.f32 %v986_v10, %v2051_v45  ;;  %v1022_v46 = vmul.f32 %v986_v10, %v2052_v16 }
 0x368   : > { %1053 = vst [vmem:[%s1901_s10 + $0xd0] sm:$0xff] %v1021_v19  ;;  %1054 = vst [vmem:[%s1901_s10 + $0xd8] sm:$0xff] %v1022_v46 }
 0x369   : > { %v994_v22 = vpop.permute.xlu1 %993 }
 0x36a   : > { %v1025_v60 = vmul.f32 %v994_v22, %v2053_v11  ;;  %v1026_v62 = vmul.f32 %v994_v22, %v2054_v23 }
 0x36c   : > { %1057 = vst [vmem:[%s1901_s10 + $0xf0] sm:$0xff] %v1025_v60  ;;  %1058 = vst [vmem:[%s1901_s10 + $0xf8] sm:$0xff] %v1026_v62 }
 0x36d   : > { %1373 = shalt.err (!%p1370_p1)
}
 0x36e   : > { %s1374_s15 = scalar_lea.hbm %s1964_s26, 4096  ;;  %s1378_s7 = scalar_lea.hbm %s2018_s5, 16384 }
 0x36f   : > { %p1375_p3 = scmp.ne.s32.totalorder %s1964_s26, %s1374_s15  ;;  %p1379_p0 = scmp.lt.u32.totalorder %s1964_s26, %s2018_s5 }
 0x370   : > { %p1380_p2 = scmp.lt.u32.totalorder %s1378_s7, %s1374_s15  ;;  %p1382_p6 = scmp.lt.u32.totalorder %s1374_s15, %s1964_s26 }
 0x371   : > { %p1376_p4 = pnand %p1375_p3, %p2055_p10 }
 0x372   : > { %p1381_p7 = por %p1380_p2, %p1379_p0 }
 0x373   : > { %p1377_p5 = pneg %p1376_p4 }
 0x374   : > { %p1383_p11 = por %p1382_p6, %p1381_p7 }
 0x376   : > { %p1384_p12 = pnand %p1383_p11, %p1377_p5 }
 0x378   : > { %1387 = shalt.err (!%p1384_p12)
}
 0x379   : > { %s1435_s25 = smov 256   ;;  %s1436_s13 = smov 16  }
 0x37a   : > { %1275 = dma.vmem_to_hbm [thread:$0]  (%p2055_p10), %s1966_s11, 4096, %s1964_s26, %s1060_s22, %s1435_s25, %s1435_s25, %s1436_s13  }
 0x37b PF: > { %p1286_p8 = scmp.ge.s32.totalorder %s1426_s21, 2  ;;  %s1089_s17 = sand.u32 1, %s1414_s18  }
 0x37c   : > { %p2056_p9 = scmp.ne.s32.totalorder %s2034_s6, 0  ;;  %s1090_s28 = scalar_lea.sflag [#allocation4], %s1089_s17 }
 0x37e   : > { %p1282_p13 = pnand %p1286_p8, %p2056_p9 }
 0x380   : > { %1409 = dma.done.wait (!%p1282_p13), %s1090_s28, 4096  }
 0x381   : > { %1411 = vsyncadd (!%p1282_p13), %s1090_s28, 4294963200  ;;  %p18_p1 = scmp.ge.s32.totalorder %s1492_s24, 6   ;;  %s2057_s18 = smov %s1418_s19 }
 0x382   : > { %s2058_s19 = smov %s1422_s20  ;;  %s2059_s20 = smov %s1504_s27 }
 0x383   : > { %s2060_s21 = smov %s1492_s24  ;;  %20 = sbr.rel (!%p18_p1) target bundleno = 5 (0x5), region = 85 }
 0x38a   :  { %1095 = vsyncpa [#allocation3], 1 }
 0x38b   :  { %1097 = vsyncpa [#allocation3 + $0x1], 1 }
 0x38c   :  { %1098 = vsyncpa [#allocation4], 1 }
 0x38d   :  { %1100 = vsyncpa [#allocation4 + $0x1], 1 }

</bundles_post_ra>
